<compile_context>
chip_gen: v7x
topology: tpu7x:2x2x1
jax: 0.10.0
libtpu: 0.0.40
codegen_flags: <defaults>
</compile_context>

<pallas_src>
import functools
import math

import jax
import jax.numpy as jnp
from jax.experimental import pallas as pl
from jax.experimental.pallas import tpu as pltpu

EPS = 1e-5
EMBED_T_SIZE = 128
EMB_SIZE = 256

TARGET_TILE_BYTES = 8 * 1024 * 1024      # per-buffer feature tile target
VMEM_LIMIT_BYTES = 64 * 1024 * 1024      # <= physical VMEM on v5e/v6e/v7x


# -----------------------------------------------------------------------------
# Tiling helpers
# -----------------------------------------------------------------------------
def _pick_block(dim, target, align):
    """Largest divisor of `dim` that is <= target and a multiple of `align`,
    else fall back to the full dim (always a legal block)."""
    if dim <= target:
        return dim
    for cand in range(min(target, dim), 0, -1):
        if dim % cand == 0 and cand % align == 0:
            return cand
    return dim


def _choose_tiles(B, C, N, itemsize):
    c_blk = _pick_block(C, 128, 8)
    n_target = max(128, TARGET_TILE_BYTES // max(1, B * c_blk * itemsize))
    n_blk = _pick_block(N, n_target, 128)
    return c_blk, n_blk


# -----------------------------------------------------------------------------
# Kernel 1: fused fc_gamma + fc_beta MLP -> final affine term
#   affine = gammas + betas + fc_gamma(t_emb) + fc_beta(t_emb)
#          = relu(t @ W1cat + b1cat) @ W2cat + (gammas + betas + b2g + b2b)
# -----------------------------------------------------------------------------
def _fused_mlp_kernel(t_ref, w1_ref, b1_ref, w2_ref, bias_ref, out_ref):
    # t: [B,128], w1: [128,512], b1: [1,512], w2: [512,C], bias: [1,C]
    h = jnp.dot(t_ref[...], w1_ref[...], preferred_element_type=jnp.float32)
    h = jnp.maximum(h + b1_ref[...], 0.0)
    y = jnp.dot(h, w2_ref[...], preferred_element_type=jnp.float32) + bias_ref[...]
    out_ref[...] = y.astype(out_ref.dtype)


def affine_mlp(t_embed, fused):
    B = t_embed.shape[0]
    C = fused["w2"].shape[1]
    vspec = pl.BlockSpec(memory_space=pltpu.MemorySpace.VMEM)
    return pl.pallas_call(
        _fused_mlp_kernel,
        out_shape=jax.ShapeDtypeStruct((B, C), jnp.float32),
        in_specs=[vspec] * 5,
        out_specs=vspec,
    )(t_embed, fused["w1"], fused["b1"], fused["w2"], fused["bias"])


# -----------------------------------------------------------------------------
# Kernel 2a: streaming per-channel mean / inv_std (reduction over dims (0, 2))
# -----------------------------------------------------------------------------
def _reduce_kernel(x_ref, mean_ref, istd_ref, mean_sc, m2_sc,
                   *, tile_n, total_n, eps):
    ni = pl.program_id(1)

    @pl.when(ni == 0)
    def _():
        mean_sc[...] = jnp.zeros_like(mean_sc)
        m2_sc[...] = jnp.zeros_like(m2_sc)

    x = x_ref[...].astype(jnp.float32)                            # [B, Cb, Nb]
    # Per-tile per-channel mean and centered sum-of-squares (mean shift keeps
    # this numerically stable vs naive sum / sum-of-squares).
    tile_sum = jnp.sum(jnp.sum(x, axis=2, keepdims=True), axis=0)  # [Cb, 1]
    tile_mean = tile_sum * (1.0 / tile_n)
    centered = x - tile_mean[None, :, :]
    tile_m2 = jnp.sum(jnp.sum(centered * centered, axis=2, keepdims=True),
                      axis=0)                                      # [Cb, 1]

    # Chan et al. parallel-variance combine with the running accumulators.
    n_t = jnp.float32(tile_n)
    n_acc = ni.astype(jnp.float32) * n_t
    n_new = n_acc + n_t
    delta = tile_mean - mean_sc[...]
    mean_sc[...] = mean_sc[...] + delta * (n_t / n_new)
    m2_sc[...] = m2_sc[...] + tile_m2 + (delta * delta) * (n_acc * n_t / n_new)

    @pl.when(ni == pl.num_programs(1) - 1)
    def _():
        denom = max(total_n - 1, 1)            # torch.var default: unbiased
        var = m2_sc[...] * (1.0 / denom)
        mean_ref[...] = mean_sc[...]
        istd_ref[...] = jax.lax.rsqrt(var + eps)   # per-channel EUP op only


# -----------------------------------------------------------------------------
# Kernel 2b: normalize sweep  (x - mean) * inv_std
# -----------------------------------------------------------------------------
def _normalize_kernel(x_ref, mean_ref, istd_ref, out_ref):
    x = x_ref[...].astype(jnp.float32)          # [B, Cb, Nb]
    mean = mean_ref[...][None, :, :]            # [1, Cb, 1]
    istd = istd_ref[...][None, :, :]
    out_ref[...] = ((x - mean) * istd).astype(out_ref.dtype)


def cbn_normalize(feature, eps=EPS):
    B, C, N = feature.shape
    itemsize = jnp.dtype(feature.dtype).itemsize
    c_blk, n_blk = _choose_tiles(B, C, N, itemsize)
    nc, nn = C // c_blk, N // n_blk

    feat_spec = pl.BlockSpec((B, c_blk, n_blk), lambda ci, ni: (0, ci, ni))
    # Stats live as [C, 1] (channels on the sublane axis) so blocks of c_blk
    # satisfy the (8, 128) rule without needing a 128-multiple channel block.
    stat_spec = pl.BlockSpec((c_blk, 1), lambda ci, ni: (ci, 0))

    mean, istd = pl.pallas_call(
        functools.partial(_reduce_kernel,
                          tile_n=B * n_blk, total_n=B * N, eps=eps),
        out_shape=(jax.ShapeDtypeStruct((C, 1), jnp.float32),
                   jax.ShapeDtypeStruct((C, 1), jnp.float32)),
        grid_spec=pltpu.PrefetchScalarGridSpec(
            num_scalar_prefetch=0,
            grid=(nc, nn),
            in_specs=[feat_spec],
            out_specs=(stat_spec, stat_spec),
            scratch_shapes=[pltpu.VMEM((c_blk, 1), jnp.float32),
                            pltpu.VMEM((c_blk, 1), jnp.float32)]),
        compiler_params=pltpu.CompilerParams(
            dimension_semantics=("parallel", "arbitrary"),
            vmem_limit_bytes=VMEM_LIMIT_BYTES),
    )(feature)

    out = pl.pallas_call(
        _normalize_kernel,
        out_shape=jax.ShapeDtypeStruct((B, C, N), feature.dtype),
        grid_spec=pltpu.PrefetchScalarGridSpec(
            num_scalar_prefetch=0,
            grid=(nc, nn),
            in_specs=[feat_spec, stat_spec, stat_spec],
            out_specs=feat_spec),
        compiler_params=pltpu.CompilerParams(
            dimension_semantics=("parallel", "parallel"),
            vmem_limit_bytes=VMEM_LIMIT_BYTES),
    )(feature, mean, istd)
    return out


# -----------------------------------------------------------------------------
# Glue: timestep embedding, parameter init, parameter fusion, full forward
# -----------------------------------------------------------------------------
# TODO(synk): timestep_embedding is not defined in cbn.py; using the standard
#             sinusoidal diffusion embedding (max_period=10000).
def timestep_embedding(t, dim, max_period=10000.0):
    half = dim // 2
    freqs = jnp.exp(
        -math.log(max_period) * jnp.arange(half, dtype=jnp.float32) / half)
    args = t.astype(jnp.float32)[:, None] * freqs[None, :]
    return jnp.concatenate([jnp.cos(args), jnp.sin(args)], axis=-1)


def _xavier_uniform(key, out_f, in_f):
    a = math.sqrt(6.0 / (in_f + out_f))
    return jax.random.uniform(key, (out_f, in_f), jnp.float32, minval=-a, maxval=a)


def init_params(key, channels, embed_t_size=EMBED_T_SIZE, emb_size=EMB_SIZE):
    k = jax.random.split(key, 4)
    return {
        "betas": jnp.zeros((channels,), jnp.float32),
        "gammas": jnp.ones((channels,), jnp.float32),
        "fc_gamma_w1": _xavier_uniform(k[0], emb_size, embed_t_size),
        "fc_gamma_b1": jnp.full((emb_size,), 0.1, jnp.float32),
        "fc_gamma_w2": _xavier_uniform(k[1], channels, emb_size),
        "fc_gamma_b2": jnp.full((channels,), 0.1, jnp.float32),
        "fc_beta_w1": _xavier_uniform(k[2], emb_size, embed_t_size),
        "fc_beta_b1": jnp.full((emb_size,), 0.1, jnp.float32),
        "fc_beta_w2": _xavier_uniform(k[3], channels, emb_size),
        "fc_beta_b2": jnp.full((channels,), 0.1, jnp.float32),
    }


def fuse_params(params):
    """Pre-transpose + fuse fc_gamma/fc_beta and fold in all constant biases.
    Done once (outside the hot path), per the perf review."""
    w1 = jnp.concatenate([params["fc_gamma_w1"].T, params["fc_beta_w1"].T],
                         axis=1)                                    # [128, 512]
    b1 = jnp.concatenate([params["fc_gamma_b1"], params["fc_beta_b1"]],
                         axis=0)                                    # [512]
    w2 = jnp.concatenate([params["fc_gamma_w2"].T, params["fc_beta_w2"].T],
                         axis=0)                                    # [512, C]
    bias = (params["gammas"] + params["betas"]
            + params["fc_gamma_b2"] + params["fc_beta_b2"])         # [C]
    return {"w1": w1, "b1": b1[None, :], "w2": w2, "bias": bias[None, :]}


def cbn_forward(fused_params, feature, t):
    """Returns (feature_normalized [B,C,N], gammas+betas term [B,C,1])."""
    t_embed = timestep_embedding(t, EMBED_T_SIZE)
    affine = affine_mlp(t_embed, fused_params)        # [B, C]
    normed = cbn_normalize(feature)                   # [B, C, N]
    return normed, affine[:, :, None]                 # matches .unsqueeze(2)


def _reference(params, feature, t):
    """Plain-JAX reference of the same forward, for a correctness check."""
    t_embed = timestep_embedding(t, EMBED_T_SIZE)

    def mlp(x, w1, b1, w2, b2):
        h = jnp.maximum(x @ w1.T + b1, 0.0)
        return h @ w2.T + b2

    db = mlp(t_embed, params["fc_beta_w1"], params["fc_beta_b1"],
             params["fc_beta_w2"], params["fc_beta_b2"])
    dg = mlp(t_embed, params["fc_gamma_w1"], params["fc_gamma_b1"],
             params["fc_gamma_w2"], params["fc_gamma_b2"])
    betas_c = params["betas"][None, :] + db
    gammas_c = params["gammas"][None, :] + dg
    mean = jnp.mean(feature, axis=(0, 2), keepdims=True)
    var = jnp.var(feature, axis=(0, 2), keepdims=True, ddof=1)  # unbiased
    normed = (feature - mean) / jnp.sqrt(var + EPS)
    return normed, (gammas_c + betas_c)[:, :, None]


if __name__ == "__main__":
    key = jax.random.PRNGKey(0)
    k_param, k_feat, k_t = jax.random.split(key, 3)

    B, C, N = 2, 4, 16
    params = init_params(k_param, channels=C)
    fused = fuse_params(params)
    feature = jax.random.normal(k_feat, (B, C, N), jnp.float32)
    t = jax.random.randint(k_t, (B,), 0, 1000)

    out, affine = cbn_forward(fused, feature, t)
    jax.block_until_ready((out, affine))

    ref_out, ref_affine = _reference(params, feature, t)
    assert jnp.allclose(out, ref_out, atol=1e-4, rtol=1e-4)
    assert jnp.allclose(affine, ref_affine, atol=1e-4, rtol=1e-4)

    print("KERNEL_OK")
</pallas_src>

<mosaic_0001>
module attributes {stable_mosaic.version = 11 : i64} {
  func.func @_fused_mlp_kernel(%arg0: memref<2x128xf32, #tpu.memory_space<vmem>>, %arg1: memref<128x512xf32, #tpu.memory_space<vmem>>, %arg2: memref<1x512xf32, #tpu.memory_space<vmem>>, %arg3: memref<512x4xf32, #tpu.memory_space<vmem>>, %arg4: memref<1x4xf32, #tpu.memory_space<vmem>>, %arg5: memref<2x4xf32, #tpu.memory_space<vmem>>) attributes {dimension_semantics = [], scalar_prefetch = 0 : i64, scratch_operands = 0 : i64, tpu.core_type = #tpu.core_type<tc>} {
    %c0 = arith.constant 0 : index
    %c0_0 = arith.constant 0 : index
    %0 = vector.load %arg0[%c0, %c0_0] : memref<2x128xf32, #tpu.memory_space<vmem>>, vector<2x128xf32>
    %c0_1 = arith.constant 0 : index
    %c0_2 = arith.constant 0 : index
    %1 = vector.load %arg1[%c0_1, %c0_2] : memref<128x512xf32, #tpu.memory_space<vmem>>, vector<128x512xf32>
    %cst = arith.constant dense<0.000000e+00> : vector<2x512xf32>
    %2 = tpu.matmul %0, %1, %cst {dimension_numbers = #tpu.dot_dimension_numbers<[1], [0], [0], [1], [0, 0, 1, 1], [], []>} : vector<2x128xf32>, vector<128x512xf32>, vector<2x512xf32> -> vector<2x512xf32>
    %c0_3 = arith.constant 0 : index
    %c0_4 = arith.constant 0 : index
    %3 = vector.load %arg2[%c0_3, %c0_4] : memref<1x512xf32, #tpu.memory_space<vmem>>, vector<1x512xf32>
    %4 = vector.broadcast %3 : vector<1x512xf32> to vector<2x512xf32>
    %5 = arith.addf %2, %4 : vector<2x512xf32>
    %cst_5 = arith.constant 0.000000e+00 : f32
    %6 = vector.broadcast %cst_5 : f32 to vector<2x512xf32>
    %7 = arith.maximumf %5, %6 : vector<2x512xf32>
    %c0_6 = arith.constant 0 : index
    %c0_7 = arith.constant 0 : index
    %8 = vector.load %arg3[%c0_6, %c0_7] : memref<512x4xf32, #tpu.memory_space<vmem>>, vector<512x4xf32>
    %cst_8 = arith.constant dense<0.000000e+00> : vector<2x4xf32>
    %9 = tpu.matmul %7, %8, %cst_8 {dimension_numbers = #tpu.dot_dimension_numbers<[1], [0], [0], [1], [0, 0, 1, 1], [], []>} : vector<2x512xf32>, vector<512x4xf32>, vector<2x4xf32> -> vector<2x4xf32>
    %c0_9 = arith.constant 0 : index
    %c0_10 = arith.constant 0 : index
    %10 = vector.load %arg4[%c0_9, %c0_10] : memref<1x4xf32, #tpu.memory_space<vmem>>, vector<1x4xf32>
    %11 = vector.broadcast %10 : vector<1x4xf32> to vector<2x4xf32>
    %12 = arith.addf %9, %11 : vector<2x4xf32>
    %c0_11 = arith.constant 0 : index
    %c0_12 = arith.constant 0 : index
    %13 = vector.load %arg5[%c0_11, %c0_12] : memref<2x4xf32, #tpu.memory_space<vmem>>, vector<2x4xf32>
    tpu.vector_store %arg5[%c0_11, %c0_12], %12 {strides = array<i32>} : memref<2x4xf32, #tpu.memory_space<vmem>>, vector<2x4xf32>,
    return
  }
}

</mosaic_0001>

<bundles_post_ra>
// kernel: tpu_custom_call.1
= control target key start
LH: loop header
LB: loop body
LE: loop exit
PB: predicated region body
PF: predicated region fallthrough
CT: control target
= control target key end

     0   :  { %v706_v7 = vmov 0.0   ;;  %s1143_s0 = inlined_call_operand.vmem [shape: f32[2,128], index: 0, kind: input, shape index: {}]   ;;  %s1144_s1 = inlined_call_operand.vmem [shape: f32[128,512], index: 1, kind: input, shape index: {}]   ;;  %s1145_s2 = inlined_call_operand.vmem [shape: f32[1,512], index: 2, kind: input, shape index: {}]   ;;  %s1146_s3 = inlined_call_operand.vmem [shape: f32[512,4], index: 3, kind: input, shape index: {}]   ;;  %s1147_s4 = inlined_call_operand.vmem [shape: f32[1,4], index: 4, kind: input, shape index: {}]   ;;  %s1148_s5 = inlined_call_operand.hbm [shape: f32[2,4], index: 5, kind: output, shape index: {}]  }
   0x1   :  { %v23_v0 = vld [vmem:[%s1144_s1 + $0x8] sm:$0xff]  ;;  %v25_v2 = vld [vmem:[%s1144_s1 + $0x18] sm:$0xff]  ;;  %v22_v5 = vld [vmem:[%s1144_s1] sm:$0xff]  ;;  %172 = vmatprep.mubr.f32.mxu0 %v706_v7  ;;  %243 = vmatprep.mubr.f32.mxu1 %v706_v7 }
   0x2   :  { %v27_v1 = vld [vmem:[%s1144_s1 + $0x28] sm:$0xff]  ;;  %v29_v4 = vld [vmem:[%s1144_s1 + $0x38] sm:$0xff]  ;;  %v26_v6 = vld [vmem:[%s1144_s1 + $0x20] sm:$0xff] }
   0x3   :  { %v552_v3 = vpack.c.bf16 %v27_v1, %v23_v0  ;;  %v584_v8 = vpack.c.bf16 %v29_v4, %v25_v2  ;;  %v554_v9 = vpack.c.bf16 %v26_v6, %v22_v5  ;;  %v24_v10 = vld [vmem:[%s1144_s1 + $0x10] sm:$0xff]  ;;  %v31_v12 = vld [vmem:[%s1144_s1 + $0x48] sm:$0xff]  ;;  %v33_v15 = vld [vmem:[%s1144_s1 + $0x58] sm:$0xff] }
   0x4   :  { %v28_v11 = vld [vmem:[%s1144_s1 + $0x30] sm:$0xff]  ;;  %v35_v14 = vld [vmem:[%s1144_s1 + $0x68] sm:$0xff]  ;;  %v37_v16 = vld [vmem:[%s1144_s1 + $0x78] sm:$0xff] }
   0x5   :  { %553 = vmatprep.subr.bf16.mxu0 %v552_v3  ;;  %v586_v13 = vpack.c.bf16 %v28_v11, %v24_v10  ;;  %585 = vmatprep.subr.bf16.mxu1 %v584_v8  ;;  %v556_v17 = vpack.c.bf16 %v35_v14, %v31_v12  ;;  %v588_v18 = vpack.c.bf16 %v37_v16, %v33_v15  ;;  %v30_v19 = vld [vmem:[%s1144_s1 + $0x40] sm:$0xff]  ;;  %v32_v21 = vld [vmem:[%s1144_s1 + $0x50] sm:$0xff]  ;;  %v39_v24 = vld [vmem:[%s1144_s1 + $0x88] sm:$0xff] }
   0x6   :  { %555 = vmatpush1.bf16.msra.mxu0 %v554_v9  ;;  %v34_v20 = vld [vmem:[%s1144_s1 + $0x60] sm:$0xff]  ;;  %v36_v23 = vld [vmem:[%s1144_s1 + $0x70] sm:$0xff]  ;;  %v43_v25 = vld [vmem:[%s1144_s1 + $0xa8] sm:$0xff] }
   0x7   :  { %587 = vmatpush1.bf16.msra.mxu1 %v586_v13  ;;  %v558_v22 = vpack.c.bf16 %v34_v20, %v30_v19  ;;  %557 = vmatprep.subr.bf16.mxu0 %v556_v17  ;;  %v590_v26 = vpack.c.bf16 %v36_v23, %v32_v21  ;;  %v560_v27 = vpack.c.bf16 %v43_v25, %v39_v24  ;;  %v41_v28 = vld [vmem:[%s1144_s1 + $0x98] sm:$0xff]  ;;  %v38_v30 = vld [vmem:[%s1144_s1 + $0x80] sm:$0xff]  ;;  %v40_v33 = vld [vmem:[%s1144_s1 + $0x90] sm:$0xff] }
   0x8   :  { %589 = vmatprep.subr.bf16.mxu1 %v588_v18  ;;  %v45_v29 = vld [vmem:[%s1144_s1 + $0xb8] sm:$0xff]  ;;  %v42_v32 = vld [vmem:[%s1144_s1 + $0xa0] sm:$0xff]  ;;  %v44_v34 = vld [vmem:[%s1144_s1 + $0xb0] sm:$0xff] }
   0x9   :  { %v592_v31 = vpack.c.bf16 %v45_v29, %v41_v28  ;;  %v562_v35 = vpack.c.bf16 %v42_v32, %v38_v30  ;;  %v47_v36 = vld [vmem:[%s1144_s1 + $0xc8] sm:$0xff]  ;;  %v49_v38 = vld [vmem:[%s1144_s1 + $0xd8] sm:$0xff]  ;;  %v594_v39 = vpack.c.bf16 %v44_v34, %v40_v33  ;;  %v46_v42 = vld [vmem:[%s1144_s1 + $0xc0] sm:$0xff] }
   0xa   :  { %559 = vmatpush1.bf16.msra.mxu0 %v558_v22  ;;  %v51_v37 = vld [vmem:[%s1144_s1 + $0xe8] sm:$0xff]  ;;  %v53_v41 = vld [vmem:[%s1144_s1 + $0xf8] sm:$0xff]  ;;  %v50_v43 = vld [vmem:[%s1144_s1 + $0xe0] sm:$0xff] }
   0xb   :  { %591 = vmatpush1.bf16.msra.mxu1 %v590_v26  ;;  %561 = vmatprep.subr.bf16.mxu0 %v560_v27  ;;  %v564_v40 = vpack.c.bf16 %v51_v37, %v47_v36  ;;  %v596_v44 = vpack.c.bf16 %v53_v41, %v49_v38  ;;  %v48_v45 = vld [vmem:[%s1144_s1 + $0xd0] sm:$0xff]  ;;  %v55_v47 = vld [vmem:[%s1144_s1 + $0x108] sm:$0xff]  ;;  %v57_v49 = vld [vmem:[%s1144_s1 + $0x118] sm:$0xff]  ;;  %v566_v51 = vpack.c.bf16 %v50_v43, %v46_v42 }
   0xc   :  { %593 = vmatprep.subr.bf16.mxu1 %v592_v31  ;;  %v52_v46 = vld [vmem:[%s1144_s1 + $0xf0] sm:$0xff]  ;;  %v59_v48 = vld [vmem:[%s1144_s1 + $0x128] sm:$0xff]  ;;  %v61_v50 = vld [vmem:[%s1144_s1 + $0x138] sm:$0xff] }
   0xd   :  { %v598_v52 = vpack.c.bf16 %v52_v46, %v48_v45  ;;  %v568_v53 = vpack.c.bf16 %v59_v48, %v55_v47  ;;  %v54_v54 = vld [vmem:[%s1144_s1 + $0x100] sm:$0xff]  ;;  %v56_v56 = vld [vmem:[%s1144_s1 + $0x110] sm:$0xff]  ;;  %v600_v57 = vpack.c.bf16 %v61_v50, %v57_v49  ;;  %v63_v59 = vld [vmem:[%s1144_s1 + $0x148] sm:$0xff] }
   0xe   :  { %563 = vmatpush1.bf16.msra.mxu0 %v562_v35  ;;  %v58_v55 = vld [vmem:[%s1144_s1 + $0x120] sm:$0xff]  ;;  %v60_v58 = vld [vmem:[%s1144_s1 + $0x130] sm:$0xff]  ;;  %v67_v60 = vld [vmem:[%s1144_s1 + $0x168] sm:$0xff] }
   0xf   :  { %595 = vmatpush1.bf16.msra.mxu1 %v594_v39  ;;  %565 = vmatprep.subr.bf16.mxu0 %v564_v40  ;;  %v65_v61 = vld [vmem:[%s1144_s1 + $0x158] sm:$0xff]  ;;  %v570_v63 = vpack.c.bf16 %v58_v55, %v54_v54  ;;  %v602_v0 = vpack.c.bf16 %v60_v58, %v56_v56  ;;  %v572_v1 = vpack.c.bf16 %v67_v60, %v63_v59  ;;  %v62_v2 = vld [vmem:[%s1144_s1 + $0x140] sm:$0xff]  ;;  %v64_v4 = vld [vmem:[%s1144_s1 + $0x150] sm:$0xff] }
  0x10   :  { %597 = vmatprep.subr.bf16.mxu1 %v596_v44  ;;  %v69_v62 = vld [vmem:[%s1144_s1 + $0x178] sm:$0xff]  ;;  %v66_v3 = vld [vmem:[%s1144_s1 + $0x160] sm:$0xff]  ;;  %v68_v6 = vld [vmem:[%s1144_s1 + $0x170] sm:$0xff] }
  0x11   :  { %v604_v5 = vpack.c.bf16 %v69_v62, %v65_v61  ;;  %v71_v7 = vld [vmem:[%s1144_s1 + $0x188] sm:$0xff]  ;;  %v73_v9 = vld [vmem:[%s1144_s1 + $0x198] sm:$0xff]  ;;  %v574_v11 = vpack.c.bf16 %v66_v3, %v62_v2  ;;  %v606_v12 = vpack.c.bf16 %v68_v6, %v64_v4  ;;  %v70_v14 = vld [vmem:[%s1144_s1 + $0x180] sm:$0xff] }
  0x12   :  { %567 = vmatpush1.bf16.msra.mxu0 %v566_v51  ;;  %v75_v8 = vld [vmem:[%s1144_s1 + $0x1a8] sm:$0xff]  ;;  %v77_v10 = vld [vmem:[%s1144_s1 + $0x1b8] sm:$0xff]  ;;  %v74_v15 = vld [vmem:[%s1144_s1 + $0x1a0] sm:$0xff] }
  0x13   :  { %599 = vmatpush1.bf16.msra.mxu1 %v598_v52  ;;  %569 = vmatprep.subr.bf16.mxu0 %v568_v53  ;;  %v576_v13 = vpack.c.bf16 %v75_v8, %v71_v7  ;;  %v72_v16 = vld [vmem:[%s1144_s1 + $0x190] sm:$0xff]  ;;  %v608_v17 = vpack.c.bf16 %v77_v10, %v73_v9  ;;  %v79_v19 = vld [vmem:[%s1144_s1 + $0x1c8] sm:$0xff]  ;;  %v81_v21 = vld [vmem:[%s1144_s1 + $0x1d8] sm:$0xff]  ;;  %v578_v23 = vpack.c.bf16 %v74_v15, %v70_v14 }
  0x14   :  { %601 = vmatprep.subr.bf16.mxu1 %v600_v57  ;;  %v76_v18 = vld [vmem:[%s1144_s1 + $0x1b0] sm:$0xff]  ;;  %v83_v20 = vld [vmem:[%s1144_s1 + $0x1e8] sm:$0xff]  ;;  %v85_v22 = vld [vmem:[%s1144_s1 + $0x1f8] sm:$0xff] }
  0x15   :  { %v610_v24 = vpack.c.bf16 %v76_v18, %v72_v16  ;;  %v580_v25 = vpack.c.bf16 %v83_v20, %v79_v19  ;;  %v78_v26 = vld [vmem:[%s1144_s1 + $0x1c0] sm:$0xff]  ;;  %v80_v28 = vld [vmem:[%s1144_s1 + $0x1d0] sm:$0xff]  ;;  %v612_v29 = vpack.c.bf16 %v85_v22, %v81_v21  ;;  %v271_v32 = vld [vmem:[%s1146_s3 + $0x88] sm:$0xff] }
  0x16   :  { %571 = vmatpush1.bf16.msra.mxu0 %v570_v63  ;;  %v82_v27 = vld [vmem:[%s1144_s1 + $0x1e0] sm:$0xff]  ;;  %v84_v30 = vld [vmem:[%s1144_s1 + $0x1f0] sm:$0xff]  ;;  %v303_v34 = vld [vmem:[%s1146_s3 + $0x188] sm:$0xff] }
  0x17   :  { %603 = vmatpush1.bf16.msra.mxu1 %v602_v0  ;;  %573 = vmatprep.subr.bf16.mxu0 %v572_v1  ;;  %v270_v31 = vld [vmem:[%s1146_s3 + $0x80] sm:$0xff]  ;;  %v582_v35 = vpack.c.bf16 %v82_v27, %v78_v26  ;;  %v614_v36 = vpack.c.bf16 %v84_v30, %v80_v28  ;;  %v255_v39 = vld [vmem:[%s1146_s3 + $0x8] sm:$0xff]  ;;  %v272_v43 = vld [vmem:[%s1146_s3 + $0x90] sm:$0xff] }
  0x18   :  { %605 = vmatprep.subr.bf16.mxu1 %v604_v5  ;;  %v302_v33 = vld [vmem:[%s1146_s3 + $0x180] sm:$0xff]  ;;  %v616_v37 = vpack.c.bf16 %v271_v32, %v270_v31  ;;  %v287_v42 = vld [vmem:[%s1146_s3 + $0x108] sm:$0xff]  ;;  %v273_v44 = vld [vmem:[%s1146_s3 + $0x98] sm:$0xff] }
  0x19   :  { %v254_v38 = vld [vmem:[%s1146_s3] sm:$0xff]  ;;  %v648_v41 = vpack.c.bf16 %v303_v34, %v302_v33  ;;  %v304_v45 = vld [vmem:[%s1146_s3 + $0x190] sm:$0xff]  ;;  %v305_v46 = vld [vmem:[%s1146_s3 + $0x198] sm:$0xff]  ;;  %v620_v50 = vpack.c.bf16 %v273_v44, %v272_v43 }
  0x1a   :  { %575 = vmatpush1.bf16.msra.mxu0 %v574_v11  ;;  %v286_v40 = vld [vmem:[%s1146_s3 + $0x100] sm:$0xff]  ;;  %v618_v48 = vpack.c.bf16 %v255_v39, %v254_v38  ;;  %v256_v51 = vld [vmem:[%s1146_s3 + $0x10] sm:$0xff]  ;;  %v257_v52 = vld [vmem:[%s1146_s3 + $0x18] sm:$0xff]  ;;  %v652_v54 = vpack.c.bf16 %v305_v46, %v304_v45 }
  0x1b   :  { %607 = vmatpush1.bf16.msra.mxu1 %v606_v12  ;;  %577 = vmatprep.subr.bf16.mxu0 %v576_v13  ;;  %v21_v47 = vld [vmem:[%s1143_s0] sm:$0x3]  ;;  %v650_v49 = vpack.c.bf16 %v287_v42, %v286_v40  ;;  %v288_v53 = vld [vmem:[%s1146_s3 + $0x110] sm:$0xff]  ;;  %v289_v55 = vld [vmem:[%s1146_s3 + $0x118] sm:$0xff]  ;;  %v622_v60 = vpack.c.bf16 %v257_v52, %v256_v51 }
  0x1c   :  { %609 = vmatprep.subr.bf16.mxu1 %v608_v17  ;;  %v274_v56 = vld [vmem:[%s1146_s3 + $0xa0] sm:$0xff]  ;;  %v275_v57 = vld [vmem:[%s1146_s3 + $0xa8] sm:$0xff]  ;;  %v654_v61 = vpack.c.bf16 %v289_v55, %v288_v53  ;;  %v276_v4 = vld [vmem:[%s1146_s3 + $0xb0] sm:$0xff] }
  0x1d   :  { %v306_v58 = vld [vmem:[%s1146_s3 + $0x1a0] sm:$0xff]  ;;  %v307_v59 = vld [vmem:[%s1146_s3 + $0x1a8] sm:$0xff]  ;;  %v624_v62 = vpack.c.bf16 %v275_v57, %v274_v56  ;;  %v277_v5 = vld [vmem:[%s1146_s3 + $0xb8] sm:$0xff] }
  0x1e   :  { %579 = vmatpush1.bf16.msra.mxu0 %v578_v23  ;;  %v258_v63 = vld [vmem:[%s1146_s3 + $0x20] sm:$0xff]  ;;  %v259_v0 = vld [vmem:[%s1146_s3 + $0x28] sm:$0xff]  ;;  %v656_v2 = vpack.c.bf16 %v307_v59, %v306_v58  ;;  %v308_v6 = vld [vmem:[%s1146_s3 + $0x1b0] sm:$0xff] }
  0x1f   :  { %611 = vmatpush1.bf16.msra.mxu1 %v610_v24  ;;  %581 = vmatprep.subr.bf16.mxu0 %v580_v25  ;;  %v290_v1 = vld [vmem:[%s1146_s3 + $0x120] sm:$0xff]  ;;  %v291_v3 = vld [vmem:[%s1146_s3 + $0x128] sm:$0xff]  ;;  %v309_v7 = vld [vmem:[%s1146_s3 + $0x1b8] sm:$0xff] }
  0x20   :  { %613 = vmatprep.subr.bf16.mxu1 %v612_v29 }
  0x22   :  { %583 = vmatpush1.bf16.msra.mxu0 %v582_v35 }
  0x23   :  { %615 = vmatpush1.bf16.msra.mxu1 %v614_v36  ;;  %617 = vmatprep.subr.bf16.mxu0 %v616_v37 }
  0x24   :  { %649 = vmatprep.subr.bf16.mxu1 %v648_v41 }
  0x25   :  { %173 = vmatmul.mubr.f32.vlgmr.msra.gmra.mrb[0].mxu0 %v21_v47 }
  0x26   :  { %244 = vmatmul.mubr.f32.vlgmr.msra.gmra.mrb[0].mxu1 %v21_v47  ;;  %619 = vmatpush3.bf16.msra.mxu0 %v618_v48 }
  0x27   :  { %651 = vmatpush3.bf16.msra.mxu1 %v650_v49  ;;  %621 = vmatprep.subr.bf16.mxu0 %v620_v50 }
  0x28   :  { %653 = vmatprep.subr.bf16.mxu1 %v652_v54 }
  0x29   :  { %10 = vsyncpa [#allocation3], 0  ;;  %v626_v8 = vpack.c.bf16 %v259_v0, %v258_v63  ;;  %v658_v9 = vpack.c.bf16 %v291_v3, %v290_v1  ;;  %v628_v10 = vpack.c.bf16 %v277_v5, %v276_v4  ;;  %v260_v11 = vld [vmem:[%s1146_s3 + $0x30] sm:$0xff]  ;;  %v261_v12 = vld [vmem:[%s1146_s3 + $0x38] sm:$0xff]  ;;  %v660_v14 = vpack.c.bf16 %v309_v7, %v308_v6  ;;  %s707_s19 = smov [#allocation2]  }
  0x2a   :  { %623 = vmatpush3.bf16.msra.mxu0 %v622_v60  ;;  %v292_v13 = vld [vmem:[%s1146_s3 + $0x130] sm:$0xff]  ;;  %v293_v15 = vld [vmem:[%s1146_s3 + $0x138] sm:$0xff]  ;;  %v278_v16 = vld [vmem:[%s1146_s3 + $0xc0] sm:$0xff]  ;;  %v630_v20 = vpack.c.bf16 %v261_v12, %v260_v11  ;;  %s473_s20 = sshll.u32 %s707_s19, 4  ;;  %vm465_vm0 = vcmask 25600   ;;  %s474_s20 = int_to_ptr.vmem [resolvable:$true] %s473_s20 }
  0x2b   :  { %655 = vmatpush3.bf16.msra.mxu1 %v654_v61  ;;  %625 = vmatprep.subr.bf16.mxu0 %v624_v62  ;;  %v279_v17 = vld [vmem:[%s1146_s3 + $0xc8] sm:$0xff]  ;;  %v310_v18 = vld [vmem:[%s1146_s3 + $0x1c0] sm:$0xff]  ;;  %v662_v21 = vpack.c.bf16 %v293_v15, %v292_v13  ;;  %v280_v28 = vld [vmem:[%s1146_s3 + $0xd0] sm:$0xff]  ;;  %s682_s21 = scalar_lea.vmem %s474_s20, 32  ;;  %p687_p1 = scmp.lt.s32.totalorder %s474_s20, %s474_s20 }
  0x2c   :  { %657 = vmatprep.subr.bf16.mxu1 %v656_v2  ;;  %v311_v19 = vld [vmem:[%s1146_s3 + $0x1c8] sm:$0xff]  ;;  %v632_v22 = vpack.c.bf16 %v279_v17, %v278_v16  ;;  %v262_v23 = vld [vmem:[%s1146_s3 + $0x40] sm:$0xff]  ;;  %v281_v29 = vld [vmem:[%s1146_s3 + $0xd8] sm:$0xff]  ;;  %v88_v2 = vlaneseq  ;;  %p683_p0 = scmp.ne.s32.totalorder %s474_s20, %s682_s21  ;;  %p688_p2 = scmp.lt.s32.totalorder %s682_s21, %s682_s21 }
  0x2d   :  { %v263_v24 = vld [vmem:[%s1146_s3 + $0x48] sm:$0xff]  ;;  %v294_v25 = vld [vmem:[%s1146_s3 + $0x140] sm:$0xff]  ;;  %v664_v26 = vpack.c.bf16 %v311_v19, %v310_v18  ;;  %v312_v30 = vld [vmem:[%s1146_s3 + $0x1d0] sm:$0xff]  ;;  %v636_v34 = vpack.c.bf16 %v281_v29, %v280_v28 }
  0x2e   :  { %627 = vmatpush3.bf16.msra.mxu0 %v626_v8  ;;  %v295_v27 = vld [vmem:[%s1146_s3 + $0x148] sm:$0xff]  ;;  %v313_v31 = vld [vmem:[%s1146_s3 + $0x1d8] sm:$0xff]  ;;  %v634_v32 = vpack.c.bf16 %v263_v24, %v262_v23  ;;  %v264_v35 = vld [vmem:[%s1146_s3 + $0x50] sm:$0xff]  ;;  %v89_v3 = vshrl.u32 %v88_v2, 7  ;;  %p689_p3 = por %p688_p2, %p687_p1 }
  0x2f   :  { %659 = vmatpush3.bf16.msra.mxu1 %v658_v9  ;;  %629 = vmatprep.subr.bf16.mxu0 %v628_v10  ;;  %v666_v33 = vpack.c.bf16 %v295_v27, %v294_v25  ;;  %v265_v36 = vld [vmem:[%s1146_s3 + $0x58] sm:$0xff]  ;;  %v296_v37 = vld [vmem:[%s1146_s3 + $0x150] sm:$0xff]  ;;  %v668_v38 = vpack.c.bf16 %v313_v31, %v312_v30  ;;  %v282_v40 = vld [vmem:[%s1146_s3 + $0xe0] sm:$0xff] }
  0x30   :  { %661 = vmatprep.subr.bf16.mxu1 %v660_v14  ;;  %v297_v39 = vld [vmem:[%s1146_s3 + $0x158] sm:$0xff]  ;;  %v283_v41 = vld [vmem:[%s1146_s3 + $0xe8] sm:$0xff]  ;;  %v314_v42 = vld [vmem:[%s1146_s3 + $0x1e0] sm:$0xff]  ;;  %v638_v44 = vpack.c.bf16 %v265_v36, %v264_v35  ;;  %v90_v4 = vsub.s32 0, %v89_v3  ;;  %v98_v6 = vsub.s32 2, %v89_v3  ;;  %v94_v7 = vsub.s32 1, %v89_v3  ;;  %p690_p4 = pnand %p689_p3, %p683_p0 }
  0x31   :  { %v315_v43 = vld [vmem:[%s1146_s3 + $0x1e8] sm:$0xff]  ;;  %v670_v45 = vpack.c.bf16 %v297_v39, %v296_v37  ;;  %v640_v46 = vpack.c.bf16 %v283_v41, %v282_v40  ;;  %v266_v48 = vld [vmem:[%s1146_s3 + $0x60] sm:$0xff]  ;;  %v284_v54 = vld [vmem:[%s1146_s3 + $0xf0] sm:$0xff]  ;;  %v102_v8 = vsub.s32 3, %v89_v3 }
  0x32   :  { %631 = vmatpush3.bf16.msra.mxu0 %v630_v20  ;;  %v672_v47 = vpack.c.bf16 %v315_v43, %v314_v42  ;;  %v267_v49 = vld [vmem:[%s1146_s3 + $0x68] sm:$0xff]  ;;  %v298_v50 = vld [vmem:[%s1146_s3 + $0x160] sm:$0xff]  ;;  %v285_v55 = vld [vmem:[%s1146_s3 + $0xf8] sm:$0xff] }
  0x33   :  { %663 = vmatpush3.bf16.msra.mxu1 %v662_v21  ;;  %633 = vmatprep.subr.bf16.mxu0 %v632_v22  ;;  %v642_v51 = vpack.c.bf16 %v267_v49, %v266_v48  ;;  %v299_v52 = vld [vmem:[%s1146_s3 + $0x168] sm:$0xff]  ;;  %v316_v56 = vld [vmem:[%s1146_s3 + $0x1f0] sm:$0xff]  ;;  %v644_v57 = vpack.c.bf16 %v285_v55, %v284_v54  ;;  %v317_v58 = vld [vmem:[%s1146_s3 + $0x1f8] sm:$0xff] }
  0x34   :  { %665 = vmatprep.subr.bf16.mxu1 %v664_v26  ;;  %v674_v53 = vpack.c.bf16 %v299_v52, %v298_v50  ;;  %v268_v59 = vld [vmem:[%s1146_s3 + $0x70] sm:$0xff]  ;;  %v269_v60 = vld [vmem:[%s1146_s3 + $0x78] sm:$0xff]  ;;  %v676_v61 = vpack.c.bf16 %v317_v58, %v316_v56  ;;  %v86_v5 = vld [vmem:[%s1145_s2] sm:$0xf] }
  0x35   :  { %v646_v62 = vpack.c.bf16 %v269_v60, %v268_v59  ;;  %v300_v63 = vld [vmem:[%s1146_s3 + $0x170] sm:$0xff]  ;;  %v301_v0 = vld [vmem:[%s1146_s3 + $0x178] sm:$0xff]  ;;  %v91_v9 = vrot.slane %v86_v5, %v90_v4  ;;  %v99_v10 = vrot.slane %v86_v5, %v98_v6  ;;  %v95_v11 = vrot.slane %v86_v5, %v94_v7  ;;  %v481_v27 = vld [vmem:[%s1147_s4] ss:$0 sm:$0xff] }
  0x36   :  { %635 = vmatpush3.bf16.msra.mxu0 %v634_v32  ;;  %v678_v1 = vpack.c.bf16 %v301_v0, %v300_v63  ;;  %v103_v12 = vrot.slane %v86_v5, %v102_v8 }
  0x37   :  { %667 = vmatpush3.bf16.msra.mxu1 %v666_v33  ;;  %637 = vmatprep.subr.bf16.mxu0 %v636_v34 }
  0x38   :  { %669 = vmatprep.subr.bf16.mxu1 %v668_v38 }
  0x3a   :  { %639 = vmatpush3.bf16.msra.mxu0 %v638_v44 }
  0x3b   :  { %671 = vmatpush3.bf16.msra.mxu1 %v670_v45  ;;  %641 = vmatprep.subr.bf16.mxu0 %v640_v46 }
  0x3c   :  { %673 = vmatprep.subr.bf16.mxu1 %v672_v47 }
  0x3e   :  { %643 = vmatpush3.bf16.msra.mxu0 %v642_v51 }
  0x3f   :  { %675 = vmatpush3.bf16.msra.mxu1 %v674_v53  ;;  %645 = vmatprep.subr.bf16.mxu0 %v644_v57 }
  0x40   :  { %677 = vmatprep.subr.bf16.mxu1 %v676_v61 }
  0x42   :  { %647 = vmatpush3.bf16.msra.mxu0 %v646_v62 }
  0x43   :  { %679 = vmatpush3.bf16.msra.mxu1 %v678_v1 }
  0xf8   :  { %v174_v13 = vpop.f32.mrb[0].mxu0 }
  0xf9   :  { %v175_v14 = vadd.f32 %v174_v13, %v91_v9  ;;  %v245_v15 = vpop.f32.mrb[0].mxu1  ;;  %v176_v16 = vpop.f32.mrb[1].mxu0 }
  0xfa   :  { %v246_v17 = vadd.f32 %v245_v15, %v99_v10  ;;  %v177_v18 = vadd.f32 %v176_v16, %v95_v11  ;;  %v247_v19 = vpop.f32.mrb[1].mxu1 }
  0xfb   :  { %v248_v20 = vadd.f32 %v247_v19, %v103_v12  ;;  %v250_v23 = vmax.f32 %v175_v14, 0.0 }
  0xfc   :  { %v252_v21 = vmax.f32 %v246_v17, 0.0  ;;  %v251_v22 = vmax.f32 %v177_v18, 0.0 }
  0xfd   :  { %v253_v24 = vmax.f32 %v248_v20, 0.0 }
  0xfe   :  { %389 = vmatprep.mubr.f32.mxu0 %v251_v22 }
  0xff   :  { %459 = vmatprep.mubr.f32.mxu1 %v253_v24  ;;  %390 = vmatmul.mubr.f32.vlgmr.msra.gmra.mrb[2].mxu0 %v250_v23 }
 0x100   :  { %460 = vmatmul.mubr.f32.vlgmr.msra.gmra.mrb[2].mxu1 %v252_v21 }
 0x1d2   :  { %v514_v25 = vpop.f32.mrb[2].mxu0 }
 0x1d3   :  { %v549_v26 = vpop.f32.mrb[2].mxu1  ;;  %v515_v28 = vpop.f32.mrb[3].mxu0 }
 0x1d4   :  { %v516_v29 = vadd.f32 %v515_v28, %v514_v25  ;;  %v550_v30 = vpop.f32.mrb[3].mxu1 }
 0x1d5   :  { %v551_v31 = vadd.f32 %v550_v30, %v549_v26 }
 0x1d6   :  { %v392_v32 = vadd.f32 %v516_v29, %v481_v27 }
 0x1d8   :  { %v462_v33 = vadd.f32 %v551_v31, %v392_v32 }
 0x1da   :  { %466 = vst.msk [vmem:[#allocation2] sm:$0x3] %vm465_vm0, %v462_v33 }
 0x1db   :  { %693 = shalt.err (!%p690_p4)
}
 0x1dc   :  { %s694_s23 = scalar_lea.hbm %s1148_s5, 32 }
 0x1dd   :  { %p695_p5 = scmp.ne.s32.totalorder %s1148_s5, %s694_s23  ;;  %p698_p6 = scmp.lt.u32.totalorder %s694_s23, %s1148_s5 }
 0x1df   :  { %p700_p7 = pnand %p698_p6, %p695_p5 }
 0x1e1   :  { %703 = shalt.err (!%p700_p7)
}
 0x1e2   :  { %476 = dma.vmem_to_hbm [thread:$0]  %s474_s20, 32, %s1148_s5, [#allocation3]  }
 0x1e3   :  { %704 = dma.done.wait [#allocation3], 32  }
 0x1e4   :  { %705 = vsyncadd [#allocation3], 4294967264 }
 0x1e5   :  { %480 = vsyncpa [#allocation3], 1 }

</bundles_post_ra>
